<compile_context>
chip_gen: v5e
topology: v5e:2x2
jax: 0.10.0
libtpu: 0.0.40
codegen_flags: <defaults>
</compile_context>

<pallas_src>
import functools

import jax
import jax.numpy as jnp
from jax.experimental import pallas as pl
from jax.experimental.pallas import tpu as pltpu


def autopad(k, p=None, d=1):
    if d > 1:
        k = d * (k - 1) + 1 if isinstance(k, int) else [d * (x - 1) + 1 for x in k]
    if p is None:
        p = k // 2 if isinstance(k, int) else [x // 2 for x in k]
    return p


def _conv_bn_silu_kernel(p_ref, w_ref, scale_ref, bias_ref, o_ref):
    """Fused GEMM + folded-BN + SiLU on one M-tile.

    p_ref:     [KKC, TILE_M]  bf16   (im2col patches, pixels on lanes)
    w_ref:     [Cout, KKC]    bf16   (reshaped conv weight)
    scale_ref: [Cout, 1]      f32    (folded BatchNorm scale)
    bias_ref:  [Cout, 1]      f32    (folded BatchNorm bias)
    o_ref:     [Cout, TILE_M] f32    (lane-dense output tile)
    """
    acc = jnp.dot(w_ref[...], p_ref[...], preferred_element_type=jnp.float32)
    y = acc * scale_ref[...] + bias_ref[...]          # BatchNorm (eval, folded)
    o_ref[...] = (y * jax.nn.sigmoid(y)).astype(o_ref.dtype)   # SiLU


def _pick_tile_m(m, kkc, cout, budget=24 * 1024 * 1024):
    """Largest lane-aligned M tile whose double-buffered working set fits the budget
    while still giving >= 2 grid steps (so the DMA pipeline can overlap compute)."""
    for t in (1024, 512, 256, 128):
        need = 2 * (kkc * t * 2        # bf16 patches tile, double-buffered
                    + cout * t * 4)    # f32 output tile, double-buffered
        need += 2 * cout * kkc * 2     # bf16 weight block (conservatively x2)
        fits = need <= budget
        pipelines = m >= 2 * t
        if fits and (pipelines or t == 128):
            return t
    return 128


@functools.partial(jax.jit,
                   static_argnames=("kernel", "stride", "padding", "dilation", "eps"))
def conv_bn_silu(x_nchw, weight, bn_gamma, bn_beta, bn_mean, bn_var,
                 kernel=1, stride=1, padding=None, dilation=1, eps=1e-5):
    """Equivalent of Conv.forward (eval-mode BatchNorm, SiLU). groups=1 only."""
    n, cin, h, w = x_nchw.shape
    cout = weight.shape[0]
    k, s, d = kernel, stride, dilation
    pad = autopad(k, padding, d)
    eff_k = d * (k - 1) + 1
    ho = (h + 2 * pad - eff_k) // s + 1
    wo = (w + 2 * pad - eff_k) // s + 1
    m = n * ho * wo
    kkc = cin * k * k

    # ---- patch extraction straight from NCHW (glue; fused by XLA), bf16 -------------
    xp = jnp.pad(x_nchw, ((0, 0), (0, 0), (pad, pad), (pad, pad)))
    taps = []
    for kh in range(k):
        for kw in range(k):
            sl = xp[:, :, kh * d: kh * d + (ho - 1) * s + 1: s,
                          kw * d: kw * d + (wo - 1) * s + 1: s]       # [N, Cin, Ho, Wo]
            taps.append(jnp.transpose(sl, (1, 0, 2, 3)).reshape(cin, m))
    # contraction rows ordered (cin-major, (kh,kw)-minor) to match weight.reshape below
    patches_t = jnp.stack(taps, axis=1).reshape(kkc, m).astype(jnp.bfloat16)

    # PyTorch weight [Cout, Cin, K, K] -> [Cout, Cin*K*K] (same (cin, kh, kw) ordering)
    wmat = weight.reshape(cout, kkc).astype(jnp.bfloat16)

    # Fold BatchNorm (eval): y = gamma * (conv - mean) / sqrt(var + eps) + beta
    inv_std = jax.lax.rsqrt(bn_var.astype(jnp.float32) + eps)
    scale = (bn_gamma * inv_std).reshape(cout, 1).astype(jnp.float32)
    bias = (bn_beta - bn_mean * bn_gamma * inv_std).reshape(cout, 1).astype(jnp.float32)

    # ---- tiled, pipelined Pallas GEMM + epilogue ------------------------------------
    tile_m = _pick_tile_m(m, kkc, cout)
    m_pad = pl.cdiv(m, tile_m) * tile_m
    if m_pad != m:
        patches_t = jnp.pad(patches_t, ((0, 0), (0, m_pad - m)))

    out_t = pl.pallas_call(
        _conv_bn_silu_kernel,
        out_shape=jax.ShapeDtypeStruct((cout, m_pad), jnp.float32),
        grid=(m_pad // tile_m,),
        in_specs=[
            pl.BlockSpec((kkc, tile_m), lambda i: (0, i)),   # patches: tile over M
            pl.BlockSpec((cout, kkc), lambda i: (0, 0)),     # weight: resident
            pl.BlockSpec((cout, 1), lambda i: (0, 0)),       # BN scale: resident
            pl.BlockSpec((cout, 1), lambda i: (0, 0)),       # BN bias: resident
        ],
        out_specs=pl.BlockSpec((cout, tile_m), lambda i: (0, i)),
        compiler_params=pltpu.CompilerParams(
            dimension_semantics=("parallel",),               # megacore sharding on v7x
            vmem_limit_bytes=48 * 1024 * 1024),
    )(patches_t, wmat, scale, bias)

    # [Cout, M] -> [Cout, N, Ho, Wo] -> NCHW
    out_t = out_t[:, :m]
    return jnp.transpose(out_t.reshape(cout, n, ho, wo), (1, 0, 2, 3))


if __name__ == "__main__":
    # Small config consistent with the module: Conv(channels_in=4, channels_out=8, kernel=3)
    N, CIN, H, W = 2, 4, 16, 16
    COUT, K = 8, 3

    key = jax.random.PRNGKey(0)
    kx, kw, kg, kb, km, kv = jax.random.split(key, 6)

    x = jax.random.normal(kx, (N, CIN, H, W), dtype=jnp.float32)
    conv_w = jax.random.normal(kw, (COUT, CIN, K, K), dtype=jnp.float32) * 0.1
    bn_gamma = 1.0 + 0.1 * jax.random.normal(kg, (COUT,), dtype=jnp.float32)
    bn_beta = 0.1 * jax.random.normal(kb, (COUT,), dtype=jnp.float32)
    bn_mean = 0.1 * jax.random.normal(km, (COUT,), dtype=jnp.float32)
    bn_var = jnp.abs(1.0 + 0.1 * jax.random.normal(kv, (COUT,), dtype=jnp.float32))

    out = conv_bn_silu(x, conv_w, bn_gamma, bn_beta, bn_mean, bn_var,
                       kernel=K, stride=1, padding=None, dilation=1)
    out = jax.block_until_ready(out)

    # Reference (f32 XLA conv + BN + SiLU); bf16 matmul operands => looser tolerance.
    ref_conv = jax.lax.conv_general_dilated(
        x, conv_w, window_strides=(1, 1), padding=((1, 1), (1, 1)),
        dimension_numbers=("NCHW", "OIHW", "NCHW"))
    scale = bn_gamma / jnp.sqrt(bn_var + 1e-5)
    ref = ref_conv * scale[None, :, None, None] + (bn_beta - bn_mean * scale)[None, :, None, None]
    ref = ref * jax.nn.sigmoid(ref)

    assert out.shape == (N, COUT, H, W)
    assert jnp.allclose(out, ref, atol=2e-2, rtol=2e-2), \
        f"max abs err = {jnp.max(jnp.abs(out - ref))}"

    print("KERNEL_OK")
</pallas_src>

<mosaic_0001>
module attributes {stable_mosaic.version = 11 : i64} {
  func.func @_conv_bn_silu_kernel(%arg0: i32, %arg1: memref<36x256xbf16, #tpu.memory_space<vmem>>, %arg2: memref<8x36xbf16, #tpu.memory_space<vmem>>, %arg3: memref<8x1xf32, #tpu.memory_space<vmem>>, %arg4: memref<8x1xf32, #tpu.memory_space<vmem>>, %arg5: memref<8x256xf32, #tpu.memory_space<vmem>>) attributes {dimension_semantics = [#tpu.dimension_semantics<parallel>], iteration_bounds = array<i64: 2>, scalar_prefetch = 0 : i64, scratch_operands = 0 : i64, tpu.core_type = #tpu.core_type<tc>, window_params = [{transform_indices = @transform_0, window_bounds = array<i64: 36, 256>}, {pipeline_mode = #tpu.pipeline_mode<synchronous>, transform_indices = @transform_1, window_bounds = array<i64: 8, 36>}, {pipeline_mode = #tpu.pipeline_mode<synchronous>, transform_indices = @transform_2, window_bounds = array<i64: 8, 1>}, {pipeline_mode = #tpu.pipeline_mode<synchronous>, transform_indices = @transform_3, window_bounds = array<i64: 8, 1>}, {transform_indices = @transform_4, window_bounds = array<i64: 8, 256>}]} {
    %c0 = arith.constant 0 : index
    %c0_0 = arith.constant 0 : index
    %0 = vector.load %arg2[%c0, %c0_0] : memref<8x36xbf16, #tpu.memory_space<vmem>>, vector<8x36xbf16>
    %c0_1 = arith.constant 0 : index
    %c0_2 = arith.constant 0 : index
    %1 = vector.load %arg1[%c0_1, %c0_2] : memref<36x256xbf16, #tpu.memory_space<vmem>>, vector<36x256xbf16>
    %cst = arith.constant dense<0.000000e+00> : vector<8x256xf32>
    %2 = tpu.matmul %0, %1, %cst {dimension_numbers = #tpu.dot_dimension_numbers<[1], [0], [0], [1], [0, 0, 1, 1], [], []>} : vector<8x36xbf16>, vector<36x256xbf16>, vector<8x256xf32> -> vector<8x256xf32>
    %c0_3 = arith.constant 0 : index
    %c0_4 = arith.constant 0 : index
    %3 = vector.load %arg3[%c0_3, %c0_4] : memref<8x1xf32, #tpu.memory_space<vmem>>, vector<8x1xf32>
    %4 = vector.broadcast %3 : vector<8x1xf32> to vector<8x256xf32>
    %5 = arith.mulf %2, %4 : vector<8x256xf32>
    %c0_5 = arith.constant 0 : index
    %c0_6 = arith.constant 0 : index
    %6 = vector.load %arg4[%c0_5, %c0_6] : memref<8x1xf32, #tpu.memory_space<vmem>>, vector<8x1xf32>
    %7 = vector.broadcast %6 : vector<8x1xf32> to vector<8x256xf32>
    %8 = arith.addf %5, %7 : vector<8x256xf32>
    %9 = arith.negf %8 : vector<8x256xf32>
    %10 = math.exp %9 : vector<8x256xf32>
    %cst_7 = arith.constant 1.000000e+00 : f32
    %11 = vector.broadcast %cst_7 : f32 to vector<8x256xf32>
    %12 = arith.addf %11, %10 : vector<8x256xf32>
    %13 = arith.divf %11, %12 : vector<8x256xf32>
    %14 = arith.mulf %8, %13 : vector<8x256xf32>
    %c0_8 = arith.constant 0 : index
    %c0_9 = arith.constant 0 : index
    %15 = vector.load %arg5[%c0_8, %c0_9] : memref<8x256xf32, #tpu.memory_space<vmem>>, vector<8x256xf32>
    tpu.vector_store %arg5[%c0_8, %c0_9], %14 {strides = array<i32>} : memref<8x256xf32, #tpu.memory_space<vmem>>, vector<8x256xf32>,
    return
  }
  func.func @transform_0(%arg0: i32) -> (i32, i32) {
    %c0_i32 = arith.constant 0 : i32
    %c0_i32_0 = arith.constant 0 : i32
    return %c0_i32, %arg0 : i32, i32
  }
  func.func @transform_1(%arg0: i32) -> (i32, i32) {
    %c0_i32 = arith.constant 0 : i32
    %c0_i32_0 = arith.constant 0 : i32
    %c0_i32_1 = arith.constant 0 : i32
    return %c0_i32, %c0_i32_0 : i32, i32
  }
  func.func @transform_2(%arg0: i32) -> (i32, i32) {
    %c0_i32 = arith.constant 0 : i32
    %c0_i32_0 = arith.constant 0 : i32
    %c0_i32_1 = arith.constant 0 : i32
    return %c0_i32, %c0_i32_0 : i32, i32
  }
  func.func @transform_3(%arg0: i32) -> (i32, i32) {
    %c0_i32 = arith.constant 0 : i32
    %c0_i32_0 = arith.constant 0 : i32
    %c0_i32_1 = arith.constant 0 : i32
    return %c0_i32, %c0_i32_0 : i32, i32
  }
  func.func @transform_4(%arg0: i32) -> (i32, i32) {
    %c0_i32 = arith.constant 0 : i32
    %c0_i32_0 = arith.constant 0 : i32
    return %c0_i32, %arg0 : i32, i32
  }
}

</mosaic_0001>

<bundles_post_ra>
// kernel: conv_bn_silu.1
= control target key start
LH: loop header
LB: loop body
LE: loop exit
PB: predicated region body
PF: predicated region fallthrough
CT: control target
= control target key end

     0   :  { %s563_s15 = smov 0   ;;  %s565_s16 = smov 0   ;;  %s624_s0 = inlined_call_operand.vmem [shape: bf16[36,512], index: 0, kind: input, shape index: {}]   ;;  %s625_s1 = inlined_call_operand.vmem [shape: bf16[8,36], index: 1, kind: input, shape index: {}]   ;;  %s626_s2 = inlined_call_operand.vmem [shape: f32[8,1], index: 2, kind: input, shape index: {}]   ;;  %s627_s3 = inlined_call_operand.vmem [shape: f32[8,1], index: 3, kind: input, shape index: {}]   ;;  %s628_s4 = inlined_call_operand.vmem [shape: f32[8,512], index: 4, kind: output, shape index: {}]  }
   0x1   :  { %s567_s17 = smov 0  }
   0x2 LB: > { %s441_s18 = sadd.s32 4294967295, %s535_s17   ;;  %s580_s19 = sadd.s32 1, %s535_s17   ;;  %s535_s17 = sphi %s567_s17, %s631_s17   ;;  %s531_s16 = sphi %s565_s16, %s630_s16   ;;  %s527_s15 = sphi %s563_s15, %s629_s15  }
   0x3   : > { %s18_s20 = ssub.s32 %s535_s17, %s580_s19  ;;  %s21_s21 = sadd.s32 1, %s531_s16 }
   0x4   : > { %p19_p0 = scmp.eq.s32.totalorder %s18_s20, 0  ;;  %p28_p1 = scmp.ne.s32.totalorder %s531_s16, %s527_s15 }
   0x5   : > { %p29_p2 = scmp.eq.s32.totalorder %s535_s17, 0  ;;  %p444_p4 = scmp.ge.s32.totalorder %s535_s17, 2 }
   0x6   : > { %s589_s22 = scalar_select %p19_p0, %s531_s16, %s21_s21  }
   0x7   : > { %p30_p3 = por %p29_p2, %p28_p1  ;;  %152 = sbr.rel (%p444_p4) target bundleno = 21 (0x15), region = 28 }
   0xc   : > { %155 = sbr.rel (!%p30_p3) target bundleno = 21 (0x15), region = 32  ;;  %s157_s23 = sand.u32 (%p30_p3), 1, %s531_s16  }
   0xd   : > { %s472_s24 = sshll.u32 (%p30_p3), %s535_s17, 3  ;;  %s477_s25 = smul.u32 (%p30_p3), 40, %s157_s23 }
   0xe   : > { %s162_s28 = scalar_lea.vmem (%p30_p3), %s624_s0, %s472_s24 }
   0xf   : > { %v199_v0 = vld [vmem:[%s162_s28] sm:$0xff] (%p30_p3)  ;;  %v201_v1 = vld [vmem:[%s162_s28 + $0x10] sm:$0xff] (%p30_p3)  ;;  %s159_s29 = scalar_lea.vmem (%p30_p3), [#allocation2], %s477_s25 }
  0x10   : > { %v203_v2 = vld [vmem:[%s162_s28 + $0x20] sm:$0xff] (%p30_p3)  ;;  %200 = vst [vmem:[%s159_s29] sm:$0xff] (%p30_p3), %v199_v0  ;;  %v205_v3 = vld [vmem:[%s162_s28 + $0x30] sm:$0xff] (%p30_p3) }
  0x11   : > { %202 = vst [vmem:[%s159_s29 + $0x8] sm:$0xff] %v201_v1  ;;  %v207_v4 = vld [vmem:[%s162_s28 + $0x40] sm:$0xff] }
  0x12   : > { %204 = vst [vmem:[%s159_s29 + $0x10] sm:$0xff] %v203_v2 }
  0x13   : > { %206 = vst [vmem:[%s159_s29 + $0x18] sm:$0xff] %v205_v3 }
  0x14   : > { %208 = vst [vmem:[%s159_s29 + $0x20] sm:$0xff] %v207_v4 }
  0x15 PF: > { %p447_p5 = scmp.ge.s32.totalorder %s535_s17, 1  ;;  %p213_p6 = scmp.lt.s32.totalorder %s535_s17, 3 }
  0x17   : > { %p214_p7 = pnand %p447_p5, %p213_p6 }
  0x18   : > { %s220_s30 = sand.u32 (!%p214_p7), 1, %s527_s15   ;;  %s448_s13 = sshll.u32 (!%p214_p7), %s441_s18, 1 }
  0x19   : > { %217 = sbr.rel (%p214_p7) target bundleno = 210 (0xd2), region = 70  ;;  %p247_p8 = scmp.lt.s32.totalorder (!%p214_p7), %s448_s13, 3 }
  0x1a   : > { %s478_s7 = smul.u32 (!%p214_p7), 40, %s220_s30 }
  0x1c   : > { %s222_s8 = scalar_lea.vmem (!%p214_p7), [#allocation2], %s478_s7 }
  0x1e   : > { %v321_v5 = vld [vmem:[%s626_s2] sm:$0xff]  ;;  %v537_v6 = vmov 0   ;;  %vm288_vm0 = vcmask 1041408   ;;  %v460_v10 = vld [vmem:[%s222_s8 + $0x10] sm:$0xf]  ;;  %vm284_vm1 = vcmask 293888  }
  0x1f   : > { %504 = vset.pattern.permute.xlu0 %v537_v6  ;;  %v258_v7 = vld [vmem:[%s222_s8 + $0x20] sm:$0x33]  ;;  %v476_v13 = vld [vmem:[%s222_s8 + $0x14] sm:$0xf0]  ;;  %v475_v14 = vld [vmem:[%s222_s8 + $0x14] sm:$0xf] }
  0x20   : > { %324 = vperm.xlu0 %504, %v321_v5   ;;  %v272_v8 = vunpack.c.l.b16 %v258_v7  ;;  %v273_v9 = vunpack.c.h.b16 %v258_v7  ;;  %v462_v15 = vld [vmem:[%s222_s8 + $0x18] sm:$0xf0]  ;;  %v461_v19 = vor.u32 %v476_v13, %v460_v10  ;;  %v452_v21 = vld [vmem:[%s222_s8] sm:$0xf]  ;;  %v474_v22 = vld [vmem:[%s222_s8 + $0x4] sm:$0xf0] }
  0x21   : > { %v329_v16 = vld [vmem:[%s627_s3] sm:$0xff]  ;;  %v465_v20 = vor.u32 %v475_v14, %v462_v15  ;;  %v454_v24 = vld [vmem:[%s222_s8 + $0x8] sm:$0xf0]  ;;  %v453_v25 = vor.u32 %v474_v22, %v452_v21  ;;  %s633_s13 = smov (!%p247_p8, %s448_s13), 3 }
  0x22   : > { %v278_v11 = vpack.c.b16 %v272_v8, %v272_v8  ;;  %v279_v12 = vpack.c.b16 %v273_v9, %v273_v9  ;;  %v473_v23 = vld [vmem:[%s222_s8 + $0x4] sm:$0xf]  ;;  %v253_v27 = vld [vmem:[%s625_s1] sm:$0xf]  ;;  %s449_s14 = sshll.u32 %s633_s13, 3 }
  0x23   : > { %v457_v26 = vor.u32 %v473_v23, %v454_v24  ;;  %s250_s18 = scalar_lea.vmem %s628_s4, %s449_s14 }
  0x24   : > { %v290_v17 = vsel %vm288_vm0, %v278_v11, 0  ;;  %v293_v18 = vsel %vm288_vm0, %v279_v12, 0 }
  0x25   : > { %300 = vmatpush.bf16.msra.mxu0 %v290_v17  ;;  %313 = vmatpush.bf16.msra.mxu1 %v293_v18 }
  0x28   : > { %332 = vperm.xlu0 %504, %v329_v16  }
  0x29   : > { %301 = vmatpush.bf16.msra.mxu0 %v461_v19  ;;  %314 = vmatpush.bf16.msra.mxu1 %v465_v20 }
  0x2d   : > { %302 = vmatpush.bf16.msra.mxu0 %v453_v25  ;;  %315 = vmatpush.bf16.msra.mxu1 %v457_v26 }
  0x30   : > { %466 = vmatmul.msk.bf16.vlgmr.msra.gmra.mxu0 %vm284_vm1, %v253_v27  ;;  %467 = vmatmul.msk.bf16.vlgmr.msra.gmra.mxu1 %vm284_vm1, %v253_v27 }
  0x92   : > { %v325_v28 = vpop.permute.xlu0 %324 }
  0x9a   : > { %v333_v33 = vpop.permute.xlu0 %332 }
  0xad   : > { %v304_v29 = vpop.f32.mrf.mxu0  ;;  %v317_v30 = vpop.f32.mrf.mxu1 }
  0xae   : > { %v327_v31 = vmul.f32 %v325_v28, %v304_v29  ;;  %v328_v32 = vmul.f32 %v325_v28, %v317_v30 }
  0xb0   : > { %v335_v34 = vadd.f32 %v333_v33, %v327_v31  ;;  %v336_v35 = vadd.f32 %v333_v33, %v328_v32 }
  0xb2   : > { %v468_v36 = vmul.f32 -1.442695, %v335_v34  ;;  %v469_v37 = vmul.f32 -1.442695, %v336_v35 }
  0xb4   : > { %505 = vpow2.f32 %v468_v36 }
  0xb5   : > { %507 = vpow2.f32 %v469_v37  ;;  %v306_v38 = vpop.f32.mrf.mxu0  ;;  %v319_v39 = vpop.f32.mrf.mxu1 }
  0xba   : > { %v506_v40 = vpop.eup %505 }
  0xbb   : > { %v508_v41 = vpop.eup %507  ;;  %v343_v42 = vadd.f32 1.0, %v506_v40 }
  0xbc   : > { %v344_v43 = vadd.f32 1.0, %v508_v41 }
  0xbd   : > { %509 = vrcp.f32 %v343_v42  ;;  %v356_v49 = vand.u32 2147483648, %v343_v42  ;;  %v354_v52 = vand.u32 2147483647, %v343_v42  ;;  %vm350_vm4 = vweird.f32 %v343_v42 }
  0xbe   : > { %511 = vrcp.f32 %v344_v43  ;;  %v371_v53 = vand.u32 2147483648, %v344_v43  ;;  %v369_v55 = vand.u32 2147483647, %v344_v43  ;;  %vm365_vm6 = vweird.f32 %v344_v43 }
  0xbf   : > { %v357_v57 = vor.u32 1.1754944e-38, %v356_v49  ;;  %vm355_vm7 = vcmp.eq.f32.partialorder %v354_v52, 8.507059e+37 }
  0xc0   : > { %v372_v60 = vor.u32 1.1754944e-38, %v371_v53  ;;  %vm370_vm9 = vcmp.eq.f32.partialorder %v369_v55, 8.507059e+37 }
  0xc3   : > { %v510_v44 = vpop.eup %509 }
  0xc4   : > { %v512_v45 = vpop.eup %511  ;;  %v346_v46 = vmul.f32 %v510_v44, %v343_v42  ;;  %vm351_vm2 = vweird.f32 %v510_v44 }
  0xc5   : > { %v361_v47 = vmul.f32 %v512_v45, %v344_v43  ;;  %vm366_vm3 = vweird.f32 %v512_v45  ;;  %vm352_vm5 = vmor %vm350_vm4, %vm351_vm2 }
  0xc6   : > { %v347_v48 = vsub.f32 1.0, %v346_v46  ;;  %vm367_vm8 = vmor %vm365_vm6, %vm366_vm3 }
  0xc7   : > { %v362_v50 = vsub.f32 1.0, %v361_v47 }
  0xc8   : > { %v348_v51 = vmul.f32 %v510_v44, %v347_v48 }
  0xc9   : > { %v363_v54 = vmul.f32 %v512_v45, %v362_v50 }
  0xca   : > { %v349_v56 = vadd.f32 %v510_v44, %v348_v51 }
  0xcb   : > { %v364_v58 = vadd.f32 %v512_v45, %v363_v54 }
  0xcc   : > { %v353_v59 = vsel %vm352_vm5, %v510_v44, %v349_v56 }
  0xcd   : > { %v358_v61 = vsel %vm355_vm7, %v357_v57, %v353_v59  ;;  %v368_v62 = vsel %vm367_vm8, %v512_v45, %v364_v58 }
  0xce   : > { %v375_v63 = vmul.f32 %v358_v61, %v335_v34  ;;  %v373_v0 = vsel %vm370_vm9, %v372_v60, %v368_v62 }
  0xcf   : > { %v376_v1 = vmul.f32 %v373_v0, %v336_v35 }
  0xd0   : > { %377 = vst [vmem:[%s250_s18] sm:$0xff] %v375_v63 }
  0xd1   : > { %378 = vst [vmem:[%s250_s18 + $0x8] sm:$0xff] %v376_v1 }
  0xd2 PF: > { %p11_p9 = scmp.ge.s32.totalorder %s580_s19, 4   ;;  %s629_s15 = smov %s531_s16 }
  0xd3   : > { %s630_s16 = smov %s589_s22  ;;  %s631_s17 = smov %s580_s19 }
  0xd4   :  { %13 = sbr.rel (!%p11_p9) target bundleno = 2 (0x2), region = 109 }

</bundles_post_ra>
